<compile_context>
chip_gen: v7x
topology: tpu7x:2x2x1
jax: 0.10.0
libtpu: 0.0.40
codegen_flags: <defaults>
</compile_context>

<pallas_src>
import jax
import jax.numpy as jnp
from jax.experimental import pallas as pl
from jax.experimental.pallas import tpu as pltpu


def _pos_add_kernel(x_ref, add_ref, o_ref):
    """Single lane-dense broadcast add.

    x_ref:   (TB, L_total*D)  a slab of batch rows
    add_ref: (1,  L_total*D)  precomputed positional addend (broadcast over batch)
    o_ref:   (TB, L_total*D)
    """
    o_ref[...] = x_ref[...] + add_ref[...]


def positional_encoding_forward(x, positional_embedding, cls_positional_embedding,
                                n_groups):
    """Pallas wrapper.

    x:   (B, L_total, D) with L_total = n_groups * L + 1
    pos: (1, L, D)
    cls: (1, 1, D)
    """
    B, L_total, D = x.shape
    _, L, _ = positional_embedding.shape
    assert L_total == n_groups * L + 1, "L_total must equal n_groups * L + 1"

    # Precompute the full per-token addend once (tiny: L_total*D elements),
    # then flatten everything so the kernel output is lane-dense.
    addend = jnp.concatenate(
        [positional_embedding] * n_groups + [cls_positional_embedding], axis=1
    ).astype(x.dtype)                                    # (1, L_total, D)
    N = L_total * D
    addend2d = addend.reshape(1, N)
    x2d = x.reshape(B, N)

    itemsize = jnp.dtype(x.dtype).itemsize
    row_bytes = N * itemsize
    target_block_bytes = 1 << 20                         # ~1 MiB per block

    # Pick TB (batch rows per grid step): either the whole batch, or a multiple
    # of 8 (sublane-aligned) sized to ~1 MiB blocks. Mosaic requires the
    # second-to-last block dim to be a multiple of 8 or the full dim.
    if B * row_bytes <= 2 * target_block_bytes:
        tb = B
    else:
        tb = max(8, (target_block_bytes // max(row_bytes, 1)) // 8 * 8)
        tb = min(tb, B)
    grid = (pl.cdiv(B, tb),)

    # Explicit VMEM budget: double-buffered in/out slabs + addend, capped at
    # 32 MiB so it fits every generation (v7x has only 64 MiB physical per TC).
    block_bytes = tb * row_bytes
    vmem_needed = 2 * 2 * block_bytes + 2 * row_bytes
    vmem_limit = int(min(max(2 * vmem_needed, 4 << 20), 32 << 20))

    out2d = pl.pallas_call(
        _pos_add_kernel,
        out_shape=jax.ShapeDtypeStruct((B, N), x.dtype),
        grid_spec=pl.GridSpec(
            grid=grid,
            in_specs=[
                pl.BlockSpec((tb, N), lambda b: (b, 0)),
                pl.BlockSpec((1, N), lambda b: (0, 0)),
            ],
            out_specs=pl.BlockSpec((tb, N), lambda b: (b, 0)),
        ),
        compiler_params=pltpu.CompilerParams(
            dimension_semantics=("parallel",),
            vmem_limit_bytes=vmem_limit,
        ),
    )(x2d, addend2d)

    return out2d.reshape(B, L_total, D)


def reference_forward(x, positional_embedding, cls_positional_embedding, n_groups):
    """Pure-JAX reference mirroring the PyTorch forward ('learned' branch)."""
    B, L_total, D = x.shape
    L = (L_total - 1) // n_groups
    groups = [x[:, i * L:(i + 1) * L, :] + positional_embedding for i in range(n_groups)]
    cls_tok = x[:, -1:, :] + cls_positional_embedding
    return jnp.concatenate(groups + [cls_tok], axis=1)


if __name__ == "__main__":
    # Module hyperparameters (small, consistent with __init__):
    image_size = 32
    patch_size = 8
    embed_dim = 32
    num_users = 2                       # n_groups
    num_patches = image_size // patch_size
    sequence_length = num_patches ** 2  # L = 16

    B = 2
    L_total = num_users * sequence_length + 1  # 33 (groups + [CLS])

    key = jax.random.PRNGKey(0)
    kx, kpos, kcls = jax.random.split(key, 3)

    # Deterministic parameter init (matches nn.Parameter(torch.randn(...)) shapes).
    positional_embedding = jax.random.normal(
        kpos, (1, sequence_length, embed_dim), dtype=jnp.float32)
    cls_positional_embedding = jax.random.normal(
        kcls, (1, 1, embed_dim), dtype=jnp.float32)

    # Input: (B, num_users * num_patches^2 + 1, embed_dim)
    x = jax.random.normal(kx, (B, L_total, embed_dim), dtype=jnp.float32)

    out = positional_encoding_forward(x, positional_embedding,
                                      cls_positional_embedding, num_users)
    out = jax.block_until_ready(out)

    ref = reference_forward(x, positional_embedding, cls_positional_embedding, num_users)
    assert out.shape == (B, L_total, embed_dim)
    assert jnp.allclose(out, ref, atol=1e-6), "Pallas output mismatch vs reference"

    # TODO(synk): the 'else' (sinusoidal) branch of the PyTorch forward() is `pass`
    # (returns None), so only the 'learned' path is implemented.

    print("KERNEL_OK")
</pallas_src>

<mosaic_0001>
module attributes {stable_mosaic.version = 11 : i64} {
  func.func @_pos_add_kernel(%arg0: i32, %arg1: memref<2x1056xf32, #tpu.memory_space<vmem>>, %arg2: memref<1x1056xf32, #tpu.memory_space<vmem>>, %arg3: memref<2x1056xf32, #tpu.memory_space<vmem>>) attributes {dimension_semantics = [#tpu.dimension_semantics<parallel>], iteration_bounds = array<i64: 1>, scalar_prefetch = 0 : i64, scratch_operands = 0 : i64, tpu.core_type = #tpu.core_type<tc>, window_params = [{transform_indices = @transform_0, window_bounds = array<i64: 2, 1056>}, {pipeline_mode = #tpu.pipeline_mode<synchronous>, transform_indices = @transform_1, window_bounds = array<i64: 1, 1056>}, {transform_indices = @transform_2, window_bounds = array<i64: 2, 1056>}]} {
    %c0 = arith.constant 0 : index
    %c0_0 = arith.constant 0 : index
    %0 = vector.load %arg1[%c0, %c0_0] : memref<2x1056xf32, #tpu.memory_space<vmem>>, vector<2x1056xf32>
    %c0_1 = arith.constant 0 : index
    %c0_2 = arith.constant 0 : index
    %1 = vector.load %arg2[%c0_1, %c0_2] : memref<1x1056xf32, #tpu.memory_space<vmem>>, vector<1x1056xf32>
    %2 = vector.broadcast %1 : vector<1x1056xf32> to vector<2x1056xf32>
    %3 = arith.addf %0, %2 : vector<2x1056xf32>
    %c0_3 = arith.constant 0 : index
    %c0_4 = arith.constant 0 : index
    %4 = vector.load %arg3[%c0_3, %c0_4] : memref<2x1056xf32, #tpu.memory_space<vmem>>, vector<2x1056xf32>
    tpu.vector_store %arg3[%c0_3, %c0_4], %3 {strides = array<i32>} : memref<2x1056xf32, #tpu.memory_space<vmem>>, vector<2x1056xf32>,
    return
  }
  func.func @transform_0(%arg0: i32) -> (i32, i32) {
    %c0_i32 = arith.constant 0 : i32
    %c0_i32_0 = arith.constant 0 : i32
    return %arg0, %c0_i32 : i32, i32
  }
  func.func @transform_1(%arg0: i32) -> (i32, i32) {
    %c0_i32 = arith.constant 0 : i32
    %c0_i32_0 = arith.constant 0 : i32
    %c0_i32_1 = arith.constant 0 : i32
    return %c0_i32, %c0_i32_0 : i32, i32
  }
  func.func @transform_2(%arg0: i32) -> (i32, i32) {
    %c0_i32 = arith.constant 0 : i32
    %c0_i32_0 = arith.constant 0 : i32
    return %arg0, %c0_i32 : i32, i32
  }
}

</mosaic_0001>

<bundles_post_ra>
// kernel: tpu_custom_call.1
= control target key start
LH: loop header
LB: loop body
LE: loop exit
PB: predicated region body
PF: predicated region fallthrough
CT: control target
= control target key end

     0   :  { %7 = vsyncpa [#allocation3], 0  ;;  %s278_s0 = inlined_call_operand.hbm [shape: f32[2,1056], index: 0, kind: input, shape index: {}]   ;;  %s279_s1 = inlined_call_operand.hbm [shape: f32[1,1056], index: 1, kind: input, shape index: {}]   ;;  %s280_s2 = inlined_call_operand.hbm [shape: f32[2,1056], index: 2, kind: output, shape index: {}]  }
   0x1   :  { %8 = vsyncpa [#allocation6], 0 }
   0x2   :  { %9 = vsyncpa [#allocation4], 0  ;;  %s223_s9 = smov [#allocation2]   ;;  %s224_s11 = smov [#allocation5]  }
   0x3   :  { %s16_s10 = sshll.u32 %s223_s9, 4  ;;  %s26_s12 = sshll.u32 %s224_s11, 4  ;;  %s17_s10 = int_to_ptr.vmem [resolvable:$true] %s16_s10  ;;  %s27_s12 = int_to_ptr.vmem [resolvable:$true] %s26_s12 }
   0x4   :  { %s151_s15 = scalar_lea.hbm %s278_s0, 288 }
   0x5   :  { %p152_p0 = scmp.ne.s32.totalorder %s278_s0, %s151_s15  ;;  %p155_p1 = scmp.lt.u32.totalorder %s151_s15, %s278_s0 }
   0x7   :  { %p157_p2 = pnand %p155_p1, %p152_p0 }
   0x9   :  { %160 = shalt.err (!%p157_p2)
}
   0xa   :  { %s161_s20 = scalar_lea.vmem %s17_s10, 288  ;;  %p166_p4 = scmp.lt.s32.totalorder %s17_s10, %s17_s10 }
   0xb   :  { %p162_p3 = scmp.ne.s32.totalorder %s17_s10, %s161_s20  ;;  %p167_p5 = scmp.lt.s32.totalorder %s161_s20, %s161_s20 }
   0xd   :  { %p168_p6 = por %p167_p5, %p166_p4 }
   0xf   :  { %p169_p7 = pnand %p168_p6, %p162_p3 }
  0x11   :  { %172 = shalt.err (!%p169_p7)
}
  0x12   :  { %19 = dma.hbm_to_vmem [thread:$0]  %s278_s0, 288, %s17_s10, [#allocation3]  }
  0x13   :  { %s173_s25 = scalar_lea.hbm %s279_s1, 144 }
  0x14   :  { %p174_p8 = scmp.ne.s32.totalorder %s279_s1, %s173_s25  ;;  %p177_p9 = scmp.lt.u32.totalorder %s173_s25, %s279_s1 }
  0x16   :  { %p179_p10 = pnand %p177_p9, %p174_p8 }
  0x18   :  { %182 = shalt.err (!%p179_p10)
}
  0x19   :  { %s183_s30 = scalar_lea.vmem %s27_s12, 144  ;;  %s187_s3 = scalar_lea.vmem %s27_s12, 160 }
  0x1a   :  { %p184_p11 = scmp.ne.s32.totalorder %s27_s12, %s183_s30  ;;  %p188_p12 = scmp.lt.s32.totalorder %s27_s12, %s27_s12 }
  0x1b   :  { %p189_p13 = scmp.lt.s32.totalorder %s187_s3, %s183_s30 }
  0x1d   :  { %p190_p0 = por %p189_p13, %p188_p12 }
  0x1f   :  { %p191_p1 = pnand %p190_p0, %p184_p11 }
  0x21   :  { %194 = shalt.err (!%p191_p1)
}
  0x22   :  { %29 = dma.hbm_to_vmem [thread:$0]  %s279_s1, 144, %s27_s12, [#allocation6]  }
  0x23   :  { %217 = dma.done.wait [#allocation3], 288  }
  0x24   :  { %218 = vsyncadd [#allocation3], 4294967008 }
  0x25   :  { %219 = dma.done.wait [#allocation6], 144  }
  0x26   :  { %220 = vsyncadd [#allocation6], 4294967152  ;;  %v43_v0 = vlaneseq  ;;  %v225_v1 = vmov 1983009808   ;;  %v39_v13 = vld [vmem:[#allocation5] sm:$0xff]  ;;  %vm128_vm0 = vcmask 254976  }
  0x27   :  { %v82_v2 = vunpack.c.l.s4 %v225_v1  ;;  %v146_v19 = vld [vmem:[#allocation5 + $0x8] ss:$0 sm:$0xff]  ;;  %v38_v24 = vld [vmem:[#allocation2 + $0x10] sm:$0x3]  ;;  %v36_v33 = vld [vmem:[#allocation2] sm:$0xff]  ;;  %s226_s1 = smov [#allocation7]  }
  0x28   :  { %v44_v3 = vshrl.u32 %v43_v0, 7  ;;  %v37_v37 = vld [vmem:[#allocation2 + $0x8] sm:$0xff]  ;;  %s136_s5 = sshll.u32 %s226_s1, 4  ;;  %s137_s5 = int_to_ptr.vmem [resolvable:$true] %s136_s5 }
  0x29   :  { %v83_v4 = vunpack.c.0.s8 %v82_v2  ;;  %s195_s6 = scalar_lea.vmem %s137_s5, 288  ;;  %p200_p3 = scmp.lt.s32.totalorder %s137_s5, %s137_s5 }
  0x2a   :  { %v45_v5 = vsub.s32 0, %v44_v3  ;;  %v49_v6 = vsub.s32 1, %v44_v3  ;;  %v53_v7 = vsub.s32 2, %v44_v3  ;;  %v57_v8 = vsub.s32 3, %v44_v3  ;;  %p196_p2 = scmp.ne.s32.totalorder %s137_s5, %s195_s6  ;;  %p201_p4 = scmp.lt.s32.totalorder %s195_s6, %s195_s6 }
  0x2b   :  { %v61_v9 = vsub.s32 4, %v44_v3  ;;  %v65_v10 = vsub.s32 5, %v44_v3  ;;  %v69_v11 = vsub.s32 6, %v44_v3  ;;  %v73_v12 = vsub.s32 7, %v44_v3 }
  0x2c   :  { %v86_v14 = vsub.s32 %v83_v4, %v44_v3  ;;  %v46_v15 = vrot.slane %v39_v13, %v45_v5  ;;  %v50_v16 = vrot.slane %v39_v13, %v49_v6  ;;  %v54_v17 = vrot.slane %v39_v13, %v53_v7  ;;  %p202_p5 = por %p201_p4, %p200_p3 }
  0x2d   :  { %v58_v18 = vrot.slane %v39_v13, %v57_v8  ;;  %v62_v20 = vrot.slane %v39_v13, %v61_v9  ;;  %v66_v21 = vrot.slane %v39_v13, %v65_v10  ;;  %v70_v22 = vrot.slane %v39_v13, %v69_v11 }
  0x2e   :  { %v74_v23 = vrot.slane %v39_v13, %v73_v12  ;;  %v79_v25 = vcombine.low %v46_v15, %v50_v16  ;;  %v119_v27 = vrot.slane %v146_v19, %v86_v14  ;;  %p203_p6 = pnand %p202_p5, %p196_p2 }
  0x2f   :  { %v80_v26 = vcombine.low %v54_v17, %v58_v18  ;;  %v96_v28 = vcombine.low %v62_v20, %v66_v21 }
  0x30   :  { %v97_v29 = vcombine.low %v70_v22, %v74_v23  ;;  %v87_v30 = vrot.slane %v79_v25, %v86_v14  ;;  %v125_v32 = vadd.f32 %v119_v27, %v38_v24 }
  0x31   :  { %v94_v31 = vrot.slane %v80_v26, %v86_v14  ;;  %v104_v34 = vrot.slane %v96_v28, %v86_v14 }
  0x32   :  { %v111_v35 = vrot.slane %v97_v29, %v86_v14  ;;  %129 = vst.msk [vmem:[#allocation7 + $0x10] sm:$0x3] %vm128_vm0, %v125_v32 }
  0x33   :  { %v95_v36 = vcombine.low %v87_v30, %v94_v31 }
  0x34   :  { %v112_v38 = vcombine.low %v104_v34, %v111_v35 }
  0x35   :  { %v123_v39 = vadd.f32 %v95_v36, %v36_v33 }
  0x36   :  { %v124_v40 = vadd.f32 %v112_v38, %v37_v37 }
  0x37   :  { %126 = vst [vmem:[#allocation7] sm:$0xff] %v123_v39 }
  0x38   :  { %127 = vst [vmem:[#allocation7 + $0x8] sm:$0xff] %v124_v40 }
  0x39   :  { %206 = shalt.err (!%p203_p6)
}
  0x3a   :  { %s207_s9 = scalar_lea.hbm %s280_s2, 288 }
  0x3b   :  { %p208_p7 = scmp.ne.s32.totalorder %s280_s2, %s207_s9  ;;  %p211_p8 = scmp.lt.u32.totalorder %s207_s9, %s280_s2 }
  0x3d   :  { %p213_p9 = pnand %p211_p8, %p208_p7 }
  0x3f   :  { %216 = shalt.err (!%p213_p9)
}
  0x40   :  { %139 = dma.vmem_to_hbm [thread:$0]  %s137_s5, 288, %s280_s2, [#allocation4]  }
  0x41   :  { %221 = dma.done.wait [#allocation4], 288  }
  0x42   :  { %222 = vsyncadd [#allocation4], 4294967008 }
  0x43   :  { %143 = vsyncpa [#allocation3], 1 }
  0x44   :  { %144 = vsyncpa [#allocation6], 1 }
  0x45   :  { %145 = vsyncpa [#allocation4], 1 }

</bundles_post_ra>
